<compile_context>
chip_gen: v5e
topology: v5e:2x2
jax: 0.10.0
libtpu: 0.0.40
codegen_flags: <defaults>
</compile_context>

<pallas_src>
import functools
import math

import jax
import jax.numpy as jnp
from jax.experimental import pallas as pl
from jax.experimental.pallas import tpu as pltpu


def _gwl_kernel(x_ref, w_ref, *rest, compute_dtype=None):
    """One grid step = Kt classes.

    x_ref : (B, Kt, D)   activations in the natural (b, k, d) layout
    w_ref : (Kt, D, O)   per-class weights
    b_ref : (Kt, 1, O)   multiplicative "bias" (optional)
    o_ref : (B, Kt*O)    flattened (class, out) columns -> lane-dense writeback
    """
    if len(rest) == 2:
        b_ref, o_ref = rest
    else:
        b_ref, o_ref = None, rest[0]

    kt, _, o_dim = w_ref.shape

    # Statically unrolled loop over the classes in this block (Kt is small and
    # known at trace time). Each iteration is a 2-D MXU matmul with f32
    # accumulation; the bias multiply is a cheap VALU epilogue.
    for k in range(kt):
        xk = x_ref[:, k, :]            # (B, D)
        wk = w_ref[k]                  # (D, O)
        if compute_dtype is not None:  # e.g. bf16 operands on v6e/v7x
            xk = xk.astype(compute_dtype)
            wk = wk.astype(compute_dtype)
        acc = jnp.dot(xk, wk, preferred_element_type=jnp.float32)  # (B, O) f32
        if b_ref is not None:
            acc = acc * b_ref[k].astype(jnp.float32)               # (1, O) bcast
        # Static lane-slice store into the flattened output block; the block's
        # HBM writeback itself is a dense, unmasked (B, Kt*O) DMA.
        o_ref[:, k * o_dim:(k + 1) * o_dim] = acc.astype(o_ref.dtype)


def _select_class_block(K, B, D, O, itemsize, sublane, budget_bytes,
                        max_unroll=64):
    """Largest legal classes-per-step block whose double-buffered tiles fit
    the VMEM budget, preferring blocks small enough to keep the in-kernel
    unroll (and trace time) bounded."""

    def step_bytes(kt):
        # x + W + bias + out blocks, each double-buffered by the pipeline.
        return 2 * itemsize * (B * kt * D + kt * D * O + kt * O + B * kt * O)

    def legal(kt):
        if kt == K:                      # full-dim blocks are always legal
            return True
        # x block (B, kt, D): kt is second-minor -> multiple of sublane pack;
        # out block (B, kt*O): last dim must be a multiple of 128.
        return (K % kt == 0) and (kt % sublane == 0) and ((kt * O) % 128 == 0)

    legal_kts = [kt for kt in range(1, K + 1) if legal(kt)]
    fitting = [kt for kt in legal_kts if step_bytes(kt) <= budget_bytes]
    preferred = [kt for kt in fitting if kt <= max_unroll]
    if preferred:
        return max(preferred)            # fewest steps within budget and cap
    if fitting:
        return min(fitting)              # nothing under the cap: smallest fit
    return min(legal_kts)                # nothing fits: minimize VMEM pressure


def group_wise_linear(x, W, bias=None, *, compute_dtype=None, fold_bias=False,
                      class_block=None, pipeline_depth=None,
                      vmem_limit_bytes=32 * 1024 * 1024):
    """y[b,k,o] = (sum_d x[b,k,d] * W[k,d,o]) * bias[k,o].

    x: (b,k,d) or (c0,b,k,d); W: (k,d,o); bias: (k,o) or None.
    compute_dtype : cast matmul operands (e.g. jnp.bfloat16); f32 accumulation.
    fold_bias     : pre-multiply the bias into W and drop the bias input stream.
    class_block   : override classes-per-grid-step (must be legal).
    pipeline_depth: optional N-deep input buffering for long grids of small tiles.
    """
    resize_flag = x.ndim == 4
    if resize_flag:
        c0, b0, K0, D0 = x.shape
        x = x.reshape(c0 * b0, K0, D0)

    B, K, D = x.shape
    Kw, Dw, O = W.shape
    if K != Kw or D != Dw:
        raise ValueError(f"shape mismatch: x {x.shape} vs W {W.shape}")

    out_dtype = jnp.result_type(x.dtype, W.dtype)

    if fold_bias and bias is not None:
        # One K*D*O pass in the wrapper; removes a VMEM input stream.
        W = (W * bias[:, None, :]).astype(W.dtype)
        bias = None
    has_bias = bias is not None

    itemsize = max(x.dtype.itemsize, W.dtype.itemsize)
    sublane = {4: 8, 2: 16, 1: 32}.get(x.dtype.itemsize, 8)
    budget = (3 * vmem_limit_bytes) // 4      # leave headroom under the limit

    if class_block is None:
        Kt = _select_class_block(K, B, D, O, itemsize, sublane, budget)
    else:
        Kt = int(class_block)
        ok = (Kt == K) or (K % Kt == 0 and Kt % sublane == 0
                           and (Kt * O) % 128 == 0)
        if not ok:
            raise ValueError(f"illegal class_block={Kt} for K={K}, O={O}")
    steps = K // Kt

    def _in_spec(shape, index_map):
        kwargs = {}
        if pipeline_depth is not None and steps > 2:
            kwargs["pipeline_mode"] = pl.Buffered(pipeline_depth)
        return pl.BlockSpec(shape, index_map, **kwargs)

    in_specs = [
        _in_spec((B, Kt, D), lambda i: (0, i, 0)),   # x, natural layout
        _in_spec((Kt, D, O), lambda i: (i, 0, 0)),   # W
    ]
    args = [x, W]
    if has_bias:
        in_specs.append(pl.BlockSpec((Kt, 1, O), lambda i: (i, 0, 0)))
        args.append(bias.reshape(K, 1, O))

    kernel = functools.partial(_gwl_kernel, compute_dtype=compute_dtype)

    out_flat = pl.pallas_call(
        kernel,
        out_shape=jax.ShapeDtypeStruct((B, K * O), out_dtype),
        grid_spec=pltpu.PrefetchScalarGridSpec(
            num_scalar_prefetch=0,
            grid=(steps,),
            in_specs=in_specs,
            out_specs=pl.BlockSpec((B, Kt * O), lambda i: (0, i)),
        ),
        compiler_params=pltpu.CompilerParams(
            dimension_semantics=("parallel",),
            vmem_limit_bytes=vmem_limit_bytes,
        ),
    )(*args)

    out = out_flat.reshape(B, K, O)   # trailing-dims reshape: no HBM pass
    if resize_flag:
        out = out.reshape(c0, b0, K, O)
    return out


def init_params(key, num_class, input_dim, output_dim, bias=True):
    stdv = 1.0 / math.sqrt(output_dim)
    kw, kb = jax.random.split(key)
    W = jax.random.uniform(kw, (num_class, input_dim, output_dim),
                           minval=-stdv, maxval=stdv, dtype=jnp.float32)
    b = None
    if bias:
        b = jax.random.uniform(kb, (num_class, output_dim),
                               minval=-stdv, maxval=stdv, dtype=jnp.float32)
    return W, b


def _reference(x, W, b):
    r = jnp.einsum("...kd,kdo->...ko", x, W)
    if b is not None:
        r = r * b
    return r


if __name__ == "__main__":
    key = jax.random.PRNGKey(0)
    k_x, k_p, k_x2, k_x4 = jax.random.split(key, 4)

    # 1) base config (matches the module's small demo sizes)
    batch, num_class, input_dim, output_dim = 2, 4, 32, 16
    x = jax.random.normal(k_x, (batch, num_class, input_dim), dtype=jnp.float32)
    W, b = init_params(k_p, num_class, input_dim, output_dim, bias=True)

    out = jax.block_until_ready(group_wise_linear(x, W, b))
    assert out.shape == (batch, num_class, output_dim)
    assert jnp.allclose(out, _reference(x, W, b), atol=1e-4, rtol=1e-4)

    # 2) 4-D (c0, b, k, d) input path
    x4 = jax.random.normal(k_x4, (3, batch, num_class, input_dim),
                           dtype=jnp.float32)
    out4 = jax.block_until_ready(group_wise_linear(x4, W, b))
    assert out4.shape == (3, batch, num_class, output_dim)
    assert jnp.allclose(out4, _reference(x4, W, b), atol=1e-4, rtol=1e-4)

    # 3) no-bias and folded-bias paths
    out_nb = jax.block_until_ready(group_wise_linear(x, W, None))
    assert jnp.allclose(out_nb, _reference(x, W, None), atol=1e-4, rtol=1e-4)
    out_fb = jax.block_until_ready(group_wise_linear(x, W, b, fold_bias=True))
    assert jnp.allclose(out_fb, _reference(x, W, b), atol=1e-4, rtol=1e-4)

    # 4) bf16 matmul operands, f32 accumulation (v6e/v7x MXU path)
    out_bf = jax.block_until_ready(
        group_wise_linear(x, W, b, compute_dtype=jnp.bfloat16))
    assert jnp.allclose(out_bf, _reference(x, W, b), atol=5e-2, rtol=5e-2)

    # 5) multi-step grid: 8 classes packed per step -> (B, 128)-lane output blocks
    B2, K2, D2, O2 = 8, 32, 128, 16
    x2 = jax.random.normal(k_x2, (B2, K2, D2), dtype=jnp.float32)
    W2, b2 = init_params(k_p, K2, D2, O2, bias=True)
    out2 = jax.block_until_ready(group_wise_linear(x2, W2, b2, class_block=8))
    assert out2.shape == (B2, K2, O2)
    assert jnp.allclose(out2, _reference(x2, W2, b2), atol=1e-4, rtol=1e-4)

    # 6) auto-selected class block on the same multi-step config
    out2_auto = jax.block_until_ready(group_wise_linear(x2, W2, b2))
    assert jnp.allclose(out2_auto, _reference(x2, W2, b2), atol=1e-4, rtol=1e-4)

    print("KERNEL_OK")
</pallas_src>

<mosaic_0001>
module attributes {stable_mosaic.version = 11 : i64} {
  func.func @_gwl_kernel(%arg0: i32, %arg1: memref<2x4x32xf32, #tpu.memory_space<vmem>>, %arg2: memref<4x32x16xf32, #tpu.memory_space<vmem>>, %arg3: memref<4x1x16xf32, #tpu.memory_space<vmem>>, %arg4: memref<2x64xf32, #tpu.memory_space<vmem>>) attributes {dimension_semantics = [#tpu.dimension_semantics<parallel>], iteration_bounds = array<i64: 1>, scalar_prefetch = 0 : i64, scratch_operands = 0 : i64, tpu.core_type = #tpu.core_type<tc>, window_params = [{transform_indices = @transform_0, window_bounds = array<i64: 2, 4, 32>}, {transform_indices = @transform_1, window_bounds = array<i64: 4, 32, 16>}, {transform_indices = @transform_2, window_bounds = array<i64: 4, 1, 16>}, {transform_indices = @transform_3, window_bounds = array<i64: 2, 64>}]} {
    %c0 = arith.constant 0 : index
    %c0_0 = arith.constant 0 : index
    %c0_1 = arith.constant 0 : index
    %0 = vector.load %arg1[%c0, %c0_0, %c0_1] : memref<2x4x32xf32, #tpu.memory_space<vmem>>, vector<2x1x32xf32>
    %1 = vector.shape_cast %0 : vector<2x1x32xf32> to vector<2x32xf32>
    %c0_2 = arith.constant 0 : index
    %c0_3 = arith.constant 0 : index
    %c0_4 = arith.constant 0 : index
    %2 = vector.load %arg2[%c0_2, %c0_3, %c0_4] : memref<4x32x16xf32, #tpu.memory_space<vmem>>, vector<1x32x16xf32>
    %3 = vector.shape_cast %2 : vector<1x32x16xf32> to vector<32x16xf32>
    %cst = arith.constant dense<0.000000e+00> : vector<2x16xf32>
    %4 = tpu.matmul %1, %3, %cst {dimension_numbers = #tpu.dot_dimension_numbers<[1], [0], [0], [1], [0, 0, 1, 1], [], []>} : vector<2x32xf32>, vector<32x16xf32>, vector<2x16xf32> -> vector<2x16xf32>
    %c0_5 = arith.constant 0 : index
    %c0_6 = arith.constant 0 : index
    %c0_7 = arith.constant 0 : index
    %5 = vector.load %arg3[%c0_5, %c0_6, %c0_7] : memref<4x1x16xf32, #tpu.memory_space<vmem>>, vector<1x1x16xf32>
    %6 = vector.shape_cast %5 : vector<1x1x16xf32> to vector<1x16xf32>
    %7 = vector.broadcast %6 : vector<1x16xf32> to vector<2x16xf32>
    %8 = arith.mulf %4, %7 : vector<2x16xf32>
    %c0_8 = arith.constant 0 : index
    %c0_9 = arith.constant 0 : index
    %9 = vector.load %arg4[%c0_8, %c0_9] : memref<2x64xf32, #tpu.memory_space<vmem>>, vector<2x16xf32>
    tpu.vector_store %arg4[%c0_8, %c0_9], %8 {strides = array<i32>} : memref<2x64xf32, #tpu.memory_space<vmem>>, vector<2x16xf32>,
    %c0_10 = arith.constant 0 : index
    %c1 = arith.constant 1 : index
    %c0_11 = arith.constant 0 : index
    %10 = vector.load %arg1[%c0_10, %c1, %c0_11] : memref<2x4x32xf32, #tpu.memory_space<vmem>>, vector<2x1x32xf32>
    %11 = vector.shape_cast %10 : vector<2x1x32xf32> to vector<2x32xf32>
    %c1_12 = arith.constant 1 : index
    %c0_13 = arith.constant 0 : index
    %c0_14 = arith.constant 0 : index
    %12 = vector.load %arg2[%c1_12, %c0_13, %c0_14] : memref<4x32x16xf32, #tpu.memory_space<vmem>>, vector<1x32x16xf32>
    %13 = vector.shape_cast %12 : vector<1x32x16xf32> to vector<32x16xf32>
    %cst_15 = arith.constant dense<0.000000e+00> : vector<2x16xf32>
    %14 = tpu.matmul %11, %13, %cst_15 {dimension_numbers = #tpu.dot_dimension_numbers<[1], [0], [0], [1], [0, 0, 1, 1], [], []>} : vector<2x32xf32>, vector<32x16xf32>, vector<2x16xf32> -> vector<2x16xf32>
    %c1_16 = arith.constant 1 : index
    %c0_17 = arith.constant 0 : index
    %c0_18 = arith.constant 0 : index
    %15 = vector.load %arg3[%c1_16, %c0_17, %c0_18] : memref<4x1x16xf32, #tpu.memory_space<vmem>>, vector<1x1x16xf32>
    %16 = vector.shape_cast %15 : vector<1x1x16xf32> to vector<1x16xf32>
    %17 = vector.broadcast %16 : vector<1x16xf32> to vector<2x16xf32>
    %18 = arith.mulf %14, %17 : vector<2x16xf32>
    %c0_19 = arith.constant 0 : index
    %c16 = arith.constant 16 : index
    %19 = vector.load %arg4[%c0_19, %c16] : memref<2x64xf32, #tpu.memory_space<vmem>>, vector<2x16xf32>
    tpu.vector_store %arg4[%c0_19, %c16], %18 {strides = array<i32>} : memref<2x64xf32, #tpu.memory_space<vmem>>, vector<2x16xf32>,
    %c0_20 = arith.constant 0 : index
    %c2 = arith.constant 2 : index
    %c0_21 = arith.constant 0 : index
    %20 = vector.load %arg1[%c0_20, %c2, %c0_21] : memref<2x4x32xf32, #tpu.memory_space<vmem>>, vector<2x1x32xf32>
    %21 = vector.shape_cast %20 : vector<2x1x32xf32> to vector<2x32xf32>
    %c2_22 = arith.constant 2 : index
    %c0_23 = arith.constant 0 : index
    %c0_24 = arith.constant 0 : index
    %22 = vector.load %arg2[%c2_22, %c0_23, %c0_24] : memref<4x32x16xf32, #tpu.memory_space<vmem>>, vector<1x32x16xf32>
    %23 = vector.shape_cast %22 : vector<1x32x16xf32> to vector<32x16xf32>
    %cst_25 = arith.constant dense<0.000000e+00> : vector<2x16xf32>
    %24 = tpu.matmul %21, %23, %cst_25 {dimension_numbers = #tpu.dot_dimension_numbers<[1], [0], [0], [1], [0, 0, 1, 1], [], []>} : vector<2x32xf32>, vector<32x16xf32>, vector<2x16xf32> -> vector<2x16xf32>
    %c2_26 = arith.constant 2 : index
    %c0_27 = arith.constant 0 : index
    %c0_28 = arith.constant 0 : index
    %25 = vector.load %arg3[%c2_26, %c0_27, %c0_28] : memref<4x1x16xf32, #tpu.memory_space<vmem>>, vector<1x1x16xf32>
    %26 = vector.shape_cast %25 : vector<1x1x16xf32> to vector<1x16xf32>
    %27 = vector.broadcast %26 : vector<1x16xf32> to vector<2x16xf32>
    %28 = arith.mulf %24, %27 : vector<2x16xf32>
    %c0_29 = arith.constant 0 : index
    %c32 = arith.constant 32 : index
    %29 = vector.load %arg4[%c0_29, %c32] : memref<2x64xf32, #tpu.memory_space<vmem>>, vector<2x16xf32>
    tpu.vector_store %arg4[%c0_29, %c32], %28 {strides = array<i32>} : memref<2x64xf32, #tpu.memory_space<vmem>>, vector<2x16xf32>,
    %c0_30 = arith.constant 0 : index
    %c3 = arith.constant 3 : index
    %c0_31 = arith.constant 0 : index
    %30 = vector.load %arg1[%c0_30, %c3, %c0_31] : memref<2x4x32xf32, #tpu.memory_space<vmem>>, vector<2x1x32xf32>
    %31 = vector.shape_cast %30 : vector<2x1x32xf32> to vector<2x32xf32>
    %c3_32 = arith.constant 3 : index
    %c0_33 = arith.constant 0 : index
    %c0_34 = arith.constant 0 : index
    %32 = vector.load %arg2[%c3_32, %c0_33, %c0_34] : memref<4x32x16xf32, #tpu.memory_space<vmem>>, vector<1x32x16xf32>
    %33 = vector.shape_cast %32 : vector<1x32x16xf32> to vector<32x16xf32>
    %cst_35 = arith.constant dense<0.000000e+00> : vector<2x16xf32>
    %34 = tpu.matmul %31, %33, %cst_35 {dimension_numbers = #tpu.dot_dimension_numbers<[1], [0], [0], [1], [0, 0, 1, 1], [], []>} : vector<2x32xf32>, vector<32x16xf32>, vector<2x16xf32> -> vector<2x16xf32>
    %c3_36 = arith.constant 3 : index
    %c0_37 = arith.constant 0 : index
    %c0_38 = arith.constant 0 : index
    %35 = vector.load %arg3[%c3_36, %c0_37, %c0_38] : memref<4x1x16xf32, #tpu.memory_space<vmem>>, vector<1x1x16xf32>
    %36 = vector.shape_cast %35 : vector<1x1x16xf32> to vector<1x16xf32>
    %37 = vector.broadcast %36 : vector<1x16xf32> to vector<2x16xf32>
    %38 = arith.mulf %34, %37 : vector<2x16xf32>
    %c0_39 = arith.constant 0 : index
    %c48 = arith.constant 48 : index
    %39 = vector.load %arg4[%c0_39, %c48] : memref<2x64xf32, #tpu.memory_space<vmem>>, vector<2x16xf32>
    tpu.vector_store %arg4[%c0_39, %c48], %38 {strides = array<i32>} : memref<2x64xf32, #tpu.memory_space<vmem>>, vector<2x16xf32>,
    return
  }
  func.func @transform_0(%arg0: i32) -> (i32, i32, i32) {
    %c0_i32 = arith.constant 0 : i32
    %c0_i32_0 = arith.constant 0 : i32
    %c0_i32_1 = arith.constant 0 : i32
    return %c0_i32, %arg0, %c0_i32_0 : i32, i32, i32
  }
  func.func @transform_1(%arg0: i32) -> (i32, i32, i32) {
    %c0_i32 = arith.constant 0 : i32
    %c0_i32_0 = arith.constant 0 : i32
    %c0_i32_1 = arith.constant 0 : i32
    return %arg0, %c0_i32, %c0_i32_0 : i32, i32, i32
  }
  func.func @transform_2(%arg0: i32) -> (i32, i32, i32) {
    %c0_i32 = arith.constant 0 : i32
    %c0_i32_0 = arith.constant 0 : i32
    %c0_i32_1 = arith.constant 0 : i32
    return %arg0, %c0_i32, %c0_i32_0 : i32, i32, i32
  }
  func.func @transform_3(%arg0: i32) -> (i32, i32) {
    %c0_i32 = arith.constant 0 : i32
    %c0_i32_0 = arith.constant 0 : i32
    return %c0_i32, %arg0 : i32, i32
  }
}

</mosaic_0001>

<bundles_post_ra>
// kernel: tpu_custom_call.1
= control target key start
LH: loop header
LB: loop body
LE: loop exit
PB: predicated region body
PF: predicated region fallthrough
CT: control target
= control target key end

     0   :  { %vm24_vm0 = vcmask 1041409   ;;  %vm26_vm1 = vcmask 261120   ;;  %s379_s0 = inlined_call_operand.vmem [shape: f32[2,4,32], index: 0, kind: input, shape index: {}]   ;;  %s380_s1 = inlined_call_operand.vmem [shape: f32[4,32,16], index: 1, kind: input, shape index: {}]   ;;  %s381_s2 = inlined_call_operand.vmem [shape: f32[4,1,16], index: 2, kind: input, shape index: {}]   ;;  %s382_s3 = inlined_call_operand.hbm [shape: f32[2,64], index: 3, kind: output, shape index: {}]  }
   0x1   :  { %v211_v0 = vld [vmem:[%s380_s1 + $0x38] sm:$0xff]  ;;  %v210_v1 = vld [vmem:[%s380_s1 + $0x30] sm:$0xff]  ;;  %v209_v4 = vld [vmem:[%s380_s1 + $0x28] sm:$0xff] }
   0x2   :  { %v217_v2 = vld [vmem:[%s380_s1 + $0x58] sm:$0xff]  ;;  %81 = vmatpush.msra.mxu1 %v211_v0  ;;  %v216_v5 = vld [vmem:[%s380_s1 + $0x50] sm:$0xff]  ;;  %v208_v7 = vld [vmem:[%s380_s1 + $0x20] sm:$0xff] }
   0x3   :  { %126 = vmatpush.msra.mxu2 %v217_v2  ;;  %v223_v3 = vld [vmem:[%s380_s1 + $0x78] sm:$0xff]  ;;  %v222_v6 = vld [vmem:[%s380_s1 + $0x70] sm:$0xff]  ;;  %v215_v8 = vld [vmem:[%s380_s1 + $0x48] sm:$0xff] }
   0x4   :  { %171 = vmatpush.msra.mxu3 %v223_v3  ;;  %82 = vmatpush.msra.mxu1 %v210_v1  ;;  %v56_v9 = vld [vmem:[%s379_s0 + $0x1] sm:$0x1]  ;;  %v57_v10 = vld [vmem:[%s379_s0 + $0x5] sm:$0x1]  ;;  %v221_v11 = vld [vmem:[%s380_s1 + $0x68] sm:$0xff] }
   0x5   :  { %127 = vmatpush.msra.mxu2 %v216_v5  ;;  %v65_v12 = vrot.slane %v57_v10, 7  ;;  %v214_v13 = vld [vmem:[%s380_s1 + $0x40] sm:$0xff]  ;;  %v20_v22 = vld [vmem:[%s380_s1 + $0x18] sm:$0xff]  ;;  %v19_v26 = vld [vmem:[%s380_s1 + $0x10] sm:$0xff] }
   0x6   :  { %172 = vmatpush.msra.mxu3 %v222_v6  ;;  %v101_v14 = vld [vmem:[%s379_s0 + $0x2] sm:$0x1]  ;;  %v102_v15 = vld [vmem:[%s379_s0 + $0x6] sm:$0x1]  ;;  %83 = vmatpush.msra.mxu1 %v209_v4  ;;  %v146_v17 = vld [vmem:[%s379_s0 + $0x3] sm:$0x1] }
   0x7   :  { %128 = vmatpush.msra.mxu2 %v215_v8  ;;  %v110_v16 = vrot.slane %v102_v15, 7  ;;  %v147_v18 = vld [vmem:[%s379_s0 + $0x7] sm:$0x1]  ;;  %v66_v19 = vsel %vm24_vm0, %v65_v12, %v56_v9  ;;  %v16_v24 = vld [vmem:[%s379_s0 + $0x4] sm:$0x1]  ;;  %41 = vmatpush.msra.mxu0 %v20_v22 }
   0x8   :  { %173 = vmatpush.msra.mxu3 %v221_v11  ;;  %v220_v20 = vld [vmem:[%s380_s1 + $0x60] sm:$0xff]  ;;  %v155_v21 = vrot.slane %v147_v18, 7  ;;  %84 = vmatpush.msra.mxu1 %v208_v7  ;;  %v23_v27 = vrot.slane %v16_v24, 7 }
   0x9   :  { %129 = vmatpush.msra.mxu2 %v214_v13  ;;  %v111_v23 = vsel %vm24_vm0, %v110_v16, %v101_v14  ;;  %212 = vmatmul.msk.f32.vlgmr.msra.gmra.mxu1 %vm26_vm1, %v66_v19 }
   0xa   :  { %218 = vmatmul.msk.f32.vlgmr.msra.gmra.mxu2 %vm26_vm1, %v111_v23  ;;  %v156_v25 = vsel %vm24_vm0, %v155_v21, %v146_v17  ;;  %174 = vmatpush.msra.mxu3 %v220_v20 }
   0xb   :  { %8 = vsyncpa [#allocation3], 0  ;;  %224 = vmatmul.msk.f32.vlgmr.msra.gmra.mxu3 %vm26_vm1, %v156_v25  ;;  %v18_v28 = vld [vmem:[%s380_s1 + $0x8] sm:$0xff]  ;;  %v15_v29 = vld [vmem:[%s379_s0] sm:$0x1]  ;;  %42 = vmatpush.msra.mxu0 %v19_v26  ;;  %s260_s8 = smov 16  }
   0xc   :  { %v17_v30 = vld [vmem:[%s380_s1] sm:$0xff]  ;;  %v25_v31 = vsel %vm24_vm0, %v23_v27, %v15_v29  ;;  %vm54_vm2 = vcmask 123904   ;;  %s261_s13 = smov 32   ;;  %s262_s14 = smov 48   ;;  %vm99_vm3 = vcmask 255104   ;;  %vm144_vm4 = vcmask 386304  }
   0xd   :  { %43 = vmatpush.msra.mxu0 %v18_v28  ;;  %v230_v32 = vld [vmem:[%s381_s2 + $0x1] ss:$0 sm:$0xff]  ;;  %v231_v35 = vld [vmem:[%s381_s2 + $0x2] ss:$0 sm:$0xff]  ;;  %v232_v36 = vld [vmem:[%s381_s2 + $0x3] ss:$0 sm:$0xff] }
   0xe   :  { %v233_v37 = vld [vmem:[%s381_s2] ss:$0 sm:$0xff]  ;;  %s263_s15 = smov [#allocation2]   ;;  %s198_s2 = sshll.u32 %s382_s3, 4  ;;  %vm189_vm5 = vcmask 517504   ;;  %s199_s2 = int_to_ptr.hbm [resolvable:$true] %s198_s2 }
   0xf   :  { %44 = vmatpush.msra.mxu0 %v17_v30  ;;  %s196_s16 = sshll.u32 %s263_s15, 4  ;;  %s197_s16 = int_to_ptr.vmem [resolvable:$true] %s196_s16 }
  0x10   :  { %207 = vmatmul.msk.f32.vlgmr.msra.gmra.mxu0 %vm26_vm1, %v25_v31 }
  0x86   :  { %v86_v33 = vpop.f32.mrf.mxu1 }
  0x87   :  { %v94_v34 = vmul.f32 %v230_v32, %v86_v33 }
  0x89   :  { %96 = vrot.lane.b32.xlu0 %v94_v34, %s260_s8 }
  0x8d   :  { %v131_v38 = vpop.f32.mrf.mxu2  ;;  %v46_v41 = vpop.f32.mrf.mxu0 }
  0x8e   :  { %v139_v39 = vmul.f32 %v231_v35, %v131_v38  ;;  %v176_v40 = vpop.f32.mrf.mxu3  ;;  %v53_v43 = vmul.f32 %v233_v37, %v46_v41 }
  0x8f   :  { %v184_v42 = vmul.f32 %v232_v36, %v176_v40 }
  0x90   :  { %55 = vst.msk [vmem:[#allocation2] sm:$0x3] %vm54_vm2, %v53_v43 }
  0x91   :  { %141 = vrot.lane.b32.xlu0 %v139_v39, %s261_s13  ;;  %186 = vrot.lane.b32.xlu1 %v184_v42, %s262_s14 }
  0xfb   :  { %v97_v44 = vpop.permute.xlu0 %96 }
  0xfc   :  { %100 = vst.msk [vmem:[#allocation2] sm:$0x3] %vm99_vm3, %v97_v44 }
 0x103   :  { %v142_v45 = vpop.permute.xlu0 %141  ;;  %v187_v46 = vpop.permute.xlu1 %186 }
 0x104   :  { %145 = vst.msk [vmem:[#allocation2] sm:$0x3] %vm144_vm4, %v142_v45 }
 0x105   :  { %190 = vst.msk [vmem:[#allocation2] sm:$0x3] %vm189_vm5, %v187_v46 }
 0x106   :  { %201 = dma.vmem_to_hbm [thread:$0]  %s197_s16, 32, %s199_s2, [#allocation3]  }
 0x107   :  { %258 = dma.done.wait [#allocation3], 32  }
 0x108   :  { %259 = vsyncadd [#allocation3], 4294967264 }
 0x109   :  { %206 = vsyncpa [#allocation3], 1 }

</bundles_post_ra>
